<compile_context>
chip_gen: v6e
topology: v6e:2x2x1
jax: 0.10.0
libtpu: 0.0.40
codegen_flags: <defaults>
</compile_context>

<pallas_src>
import jax
import jax.numpy as jnp
from jax.experimental import pallas as pl
from jax.experimental.pallas import tpu as pltpu

HIDDEN = 256      # fc1 output width
N_PAD = 128       # lane-dense padded fc2 output width (real out_dim = 2)


def mlp_kernel(x_ref, w1_ref, b1_ref, w2_ref, b2_ref, o_ref):
    # fc1: bf16 x @ bf16 W1 on the MXU, f32 accumulation; bias + ReLU in f32.
    h = jnp.dot(x_ref[...], w1_ref[...], preferred_element_type=jnp.float32)
    h = jnp.maximum(h + b1_ref[...], 0.0)          # b1 is (1, 256), broadcasts over batch
    # fc2: cast activations to bf16 for an MXU-native matmul, accumulate f32.
    y = jnp.dot(h.astype(jnp.bfloat16), w2_ref[...],
                preferred_element_type=jnp.float32)
    o_ref[...] = y + b2_ref[...]                   # b2 is (1, 128) zero-padded past col 2


def prepare_params(w1, b1, w2, b2):
    """One-time weight prep (amortized across calls):
    pad K to a multiple of 128, pad fc2 out-dim to 128 lanes, cast weights to bf16.

    w1: [input_dim, 256]  b1: [256] or [1, 256]
    w2: [256, 2]          b2: [2]  or [1, 2]
    """
    K, H = w1.shape
    N = w2.shape[1]
    K_pad = pl.cdiv(K, 128) * 128

    w1_p = jnp.zeros((K_pad, H), jnp.bfloat16).at[:K, :].set(w1.astype(jnp.bfloat16))
    b1_p = jnp.asarray(b1, jnp.float32).reshape(1, H)
    w2_p = jnp.zeros((H, N_PAD), jnp.bfloat16).at[:, :N].set(w2.astype(jnp.bfloat16))
    b2_p = jnp.zeros((1, N_PAD), jnp.float32).at[:, :N].set(
        jnp.asarray(b2, jnp.float32).reshape(1, N))
    return w1_p, b1_p, w2_p, b2_p, N


def privacy_aware_email_classifier(x, w1_p, b1_p, w2_p, b2_p, n_out=2):
    """x: [B, input_dim] f32  ->  [B, n_out] f32 logits.
    Weights must have been processed by prepare_params."""
    B, K = x.shape
    K_pad = w1_p.shape[0]
    B_pad = pl.cdiv(max(B, 8), 8) * 8  # keep sublane dim a multiple of 8

    # Per-call activation prep: zero-pad the feature dim and cast to bf16.
    x_p = jnp.zeros((B_pad, K_pad), jnp.bfloat16).at[:B, :K].set(x.astype(jnp.bfloat16))

    out = pl.pallas_call(
        mlp_kernel,
        out_shape=jax.ShapeDtypeStruct((B_pad, N_PAD), jnp.float32),
        in_specs=[
            pl.BlockSpec((B_pad, K_pad), lambda: (0, 0)),
            pl.BlockSpec((K_pad, HIDDEN), lambda: (0, 0)),
            pl.BlockSpec((1, HIDDEN), lambda: (0, 0)),
            pl.BlockSpec((HIDDEN, N_PAD), lambda: (0, 0)),
            pl.BlockSpec((1, N_PAD), lambda: (0, 0)),
        ],
        out_specs=pl.BlockSpec((B_pad, N_PAD), lambda: (0, 0)),
        compiler_params=pltpu.CompilerParams(vmem_limit_bytes=16 << 20),
    )(x_p, w1_p, b1_p, w2_p, b2_p)

    return out[:B, :n_out]


def init_params(key, input_dim=2000, hidden=HIDDEN, out_dim=2):
    """Deterministic synthetic init mimicking nn.Linear's uniform(-1/sqrt(in), 1/sqrt(in)).
    Stored as [in, out] (transpose of PyTorch's [out, in]) so the kernel computes x @ W."""
    k1, k2, k3, k4 = jax.random.split(key, 4)
    lim1 = 1.0 / jnp.sqrt(jnp.float32(input_dim))
    lim2 = 1.0 / jnp.sqrt(jnp.float32(hidden))
    w1 = jax.random.uniform(k1, (input_dim, hidden), jnp.float32, -lim1, lim1)
    b1 = jax.random.uniform(k2, (1, hidden), jnp.float32, -lim1, lim1)
    w2 = jax.random.uniform(k3, (hidden, out_dim), jnp.float32, -lim2, lim2)
    b2 = jax.random.uniform(k4, (1, out_dim), jnp.float32, -lim2, lim2)
    return w1, b1, w2, b2


if __name__ == "__main__":
    key = jax.random.PRNGKey(0)
    k_x, k_p = jax.random.split(key)

    B, INPUT_DIM = 8, 2000
    x = jax.random.normal(k_x, (B, INPUT_DIM), jnp.float32)
    w1, b1, w2, b2 = init_params(k_p, input_dim=INPUT_DIM)

    # One-time weight prep (bf16 cast + K/N padding), reused across calls.
    w1_p, b1_p, w2_p, b2_p, n_out = prepare_params(w1, b1, w2, b2)

    out = privacy_aware_email_classifier(x, w1_p, b1_p, w2_p, b2_p, n_out=n_out)
    out = jax.block_until_ready(out)
    assert out.shape == (B, 2)

    # Reference 1: emulate the bf16 input quantization with f32 math (tight match).
    to_f32 = lambda a: a.astype(jnp.bfloat16).astype(jnp.float32)
    h_ref = jnp.maximum(to_f32(x) @ to_f32(w1) + b1, 0.0)
    ref_q = to_f32(h_ref) @ to_f32(w2) + b2
    assert jnp.allclose(out, ref_q, atol=1e-2, rtol=1e-2)

    # Reference 2: pure f32 PyTorch-equivalent forward (looser: bf16-quantized operands).
    ref_f32 = jnp.maximum(x @ w1 + b1, 0.0) @ w2 + b2
    assert jnp.allclose(out, ref_f32, atol=5e-2, rtol=5e-2)

    print("KERNEL_OK")
</pallas_src>

<mosaic_0001>
module attributes {stable_mosaic.version = 11 : i64} {
  func.func @mlp_kernel(%arg0: memref<8x2048xbf16, #tpu.memory_space<vmem>>, %arg1: memref<2048x256xbf16, #tpu.memory_space<vmem>>, %arg2: memref<1x256xf32, #tpu.memory_space<vmem>>, %arg3: memref<256x128xbf16, #tpu.memory_space<vmem>>, %arg4: memref<1x128xf32, #tpu.memory_space<vmem>>, %arg5: memref<8x128xf32, #tpu.memory_space<vmem>>) attributes {dimension_semantics = [], scalar_prefetch = 0 : i64, scratch_operands = 0 : i64, tpu.core_type = #tpu.core_type<tc>} {
    %c0 = arith.constant 0 : index
    %c0_0 = arith.constant 0 : index
    %0 = vector.load %arg0[%c0, %c0_0] : memref<8x2048xbf16, #tpu.memory_space<vmem>>, vector<8x2048xbf16>
    %c0_1 = arith.constant 0 : index
    %c0_2 = arith.constant 0 : index
    %1 = vector.load %arg1[%c0_1, %c0_2] : memref<2048x256xbf16, #tpu.memory_space<vmem>>, vector<2048x256xbf16>
    %cst = arith.constant dense<0.000000e+00> : vector<8x256xf32>
    %2 = tpu.matmul %0, %1, %cst {dimension_numbers = #tpu.dot_dimension_numbers<[1], [0], [0], [1], [0, 0, 1, 1], [], []>} : vector<8x2048xbf16>, vector<2048x256xbf16>, vector<8x256xf32> -> vector<8x256xf32>
    %c0_3 = arith.constant 0 : index
    %c0_4 = arith.constant 0 : index
    %3 = vector.load %arg2[%c0_3, %c0_4] : memref<1x256xf32, #tpu.memory_space<vmem>>, vector<1x256xf32>
    %4 = vector.broadcast %3 : vector<1x256xf32> to vector<8x256xf32>
    %5 = arith.addf %2, %4 : vector<8x256xf32>
    %cst_5 = arith.constant 0.000000e+00 : f32
    %6 = vector.broadcast %cst_5 : f32 to vector<8x256xf32>
    %7 = arith.maximumf %5, %6 : vector<8x256xf32>
    %8 = arith.truncf %7 : vector<8x256xf32> to vector<8x256xbf16>
    %c0_6 = arith.constant 0 : index
    %c0_7 = arith.constant 0 : index
    %9 = vector.load %arg3[%c0_6, %c0_7] : memref<256x128xbf16, #tpu.memory_space<vmem>>, vector<256x128xbf16>
    %cst_8 = arith.constant dense<0.000000e+00> : vector<8x128xf32>
    %10 = tpu.matmul %8, %9, %cst_8 {dimension_numbers = #tpu.dot_dimension_numbers<[1], [0], [0], [1], [0, 0, 1, 1], [], []>} : vector<8x256xbf16>, vector<256x128xbf16>, vector<8x128xf32> -> vector<8x128xf32>
    %c0_9 = arith.constant 0 : index
    %c0_10 = arith.constant 0 : index
    %11 = vector.load %arg4[%c0_9, %c0_10] : memref<1x128xf32, #tpu.memory_space<vmem>>, vector<1x128xf32>
    %12 = vector.broadcast %11 : vector<1x128xf32> to vector<8x128xf32>
    %13 = arith.addf %10, %12 : vector<8x128xf32>
    %c0_11 = arith.constant 0 : index
    %c0_12 = arith.constant 0 : index
    %14 = vector.load %arg5[%c0_11, %c0_12] : memref<8x128xf32, #tpu.memory_space<vmem>>, vector<8x128xf32>
    tpu.vector_store %arg5[%c0_11, %c0_12], %13 {strides = array<i32>} : memref<8x128xf32, #tpu.memory_space<vmem>>, vector<8x128xf32>,
    return
  }
}

</mosaic_0001>

<bundles_post_ra>
// kernel: tpu_custom_call.1
= control target key start
LH: loop header
LB: loop body
LE: loop exit
PB: predicated region body
PF: predicated region fallthrough
CT: control target
= control target key end

     0   :  { %10 = vsyncpa [#allocation3], 0  ;;  %s3110_s0 = inlined_call_operand.hbm [shape: bf16[8,2048], index: 0, kind: input, shape index: {}]   ;;  %s3111_s1 = inlined_call_operand.hbm [shape: bf16[2048,256], index: 1, kind: input, shape index: {}]   ;;  %s3112_s2 = inlined_call_operand.vmem [shape: f32[1,256], index: 2, kind: input, shape index: {}]   ;;  %s3113_s3 = inlined_call_operand.hbm [shape: bf16[256,128], index: 3, kind: input, shape index: {}]   ;;  %s3114_s4 = inlined_call_operand.vmem [shape: f32[1,128], index: 4, kind: input, shape index: {}]   ;;  %s3115_s5 = inlined_call_operand.hbm [shape: f32[8,128], index: 5, kind: output, shape index: {}]  }
   0x1   :  { %11 = vsyncpa [#allocation6], 0 }
   0x2   :  { %12 = vsyncpa [#allocation4], 0  ;;  %s3018_s18 = smov [#allocation5]  }
   0x3   :  { %s28_s19 = sshll.u32 %s3018_s18, 4  ;;  %s29_s19 = int_to_ptr.vmem [resolvable:$true] %s28_s19 }
   0x4   :  { %s2940_s20 = scalar_lea.vmem %s29_s19, 32768  ;;  %p2945_p1 = scmp.lt.s32.totalorder %s29_s19, %s29_s19 }
   0x5   :  { %p2941_p0 = scmp.ne.s32.totalorder %s29_s19, %s2940_s20  ;;  %p2946_p2 = scmp.lt.s32.totalorder %s2940_s20, %s2940_s20 }
   0x7   :  { %p2947_p3 = por %p2946_p2, %p2945_p1 }
   0x9   :  { %p2948_p4 = pnand %p2947_p3, %p2941_p0 }
   0xb   :  { %2951 = shalt.err (!%p2948_p4)
}
   0xc   :  { %s3019_s21 = smov 128   ;;  %s3020_s22 = smov 8  }
   0xd   :  { %34 = dma.hbm_to_vmem [thread:$0]  %s3111_s1, 32768, %s29_s19, [#allocation6], %s3019_s21, %s3019_s21, %s3020_s22  }
   0xe   :  { %s3021_s25 = smov [#allocation2]   ;;  %s3022_s27 = smov [#allocation7]  }
   0xf   :  { %s19_s26 = sshll.u32 %s3021_s25, 4  ;;  %s42_s28 = sshll.u32 %s3022_s27, 4  ;;  %s20_s26 = int_to_ptr.vmem [resolvable:$true] %s19_s26  ;;  %s43_s28 = int_to_ptr.vmem [resolvable:$true] %s42_s28 }
  0x10   :  { %s2960_s29 = scalar_lea.vmem %s20_s26, 1024  ;;  %p2965_p6 = scmp.lt.s32.totalorder %s20_s26, %s20_s26 }
  0x11   :  { %p2961_p5 = scmp.ne.s32.totalorder %s20_s26, %s2960_s29  ;;  %p2966_p7 = scmp.lt.s32.totalorder %s2960_s29, %s2960_s29 }
  0x13   :  { %p2967_p8 = por %p2966_p7, %p2965_p6 }
  0x15   :  { %p2968_p9 = pnand %p2967_p8, %p2961_p5 }
  0x17   :  { %2971 = shalt.err (!%p2968_p9)
}
  0x18   :  { %22 = dma.hbm_to_vmem [thread:$0]  %s3110_s0, 1024, %s20_s26, [#allocation3]  }
  0x19   :  { %s2980_s7 = scalar_lea.vmem %s43_s28, 2048  ;;  %p2985_p11 = scmp.lt.s32.totalorder %s43_s28, %s43_s28 }
  0x1a   :  { %p2981_p10 = scmp.ne.s32.totalorder %s43_s28, %s2980_s7  ;;  %p2986_p12 = scmp.lt.s32.totalorder %s2980_s7, %s2980_s7 }
  0x1c   :  { %p2987_p13 = por %p2986_p12, %p2985_p11 }
  0x1e   :  { %p2988_p0 = pnand %p2987_p13, %p2981_p10 }
  0x20   :  { %2991 = shalt.err (!%p2988_p0)
}
  0x21   :  { %s3023_s1 = smov 64   ;;  %s3024_s8 = smov 4  }
  0x22   :  { %48 = dma.hbm_to_vmem [thread:$0]  %s3113_s3, 2048, %s43_s28, [#allocation6], %s3023_s1, %s3023_s1, %s3024_s8  }
  0x23   :  { %3012 = dma.done.wait [#allocation3], 1024  }
  0x24   :  { %3013 = vsyncadd [#allocation3], 4294966272 }
  0x25   :  { %3014 = dma.done.wait [#allocation6], 34816  }
  0x26   :  { %3015 = vsyncadd [#allocation6], 4294932480  ;;  %v2516_v0 = vld [vmem:[#allocation5 + $0x74] ss:$8 sps:$4 sm:$0xff]   ;;  %v2520_v2 = vld [vmem:[#allocation5 + $0x70] ss:$8 sps:$4 sm:$0xff]  }
  0x27   :  { %v2518_v1 = vld [vmem:[#allocation5 + $0x174] ss:$8 sps:$4 sm:$0xff]   ;;  %1673 = vmatprep.subr.bf16.mxu0 %v2516_v0  ;;  %v2521_v3 = vld [vmem:[#allocation5 + $0x170] ss:$8 sps:$4 sm:$0xff]   ;;  %v2522_v4 = vld [vmem:[#allocation5 + $0x64] ss:$8 sps:$4 sm:$0xff]  }
  0x28   :  { %1714 = vmatprep.subr.bf16.mxu1 %v2518_v1  ;;  %1674 = vmatpush1.bf16.msra.mxu0 %v2520_v2  ;;  %v2524_v5 = vld [vmem:[#allocation5 + $0x164] ss:$8 sps:$4 sm:$0xff]   ;;  %v2526_v6 = vld [vmem:[#allocation5 + $0x60] ss:$8 sps:$4 sm:$0xff]   ;;  %v2528_v8 = vld [vmem:[#allocation5 + $0x54] ss:$8 sps:$4 sm:$0xff]  }
  0x29   :  { %1715 = vmatpush1.bf16.msra.mxu1 %v2521_v3  ;;  %1675 = vmatprep.subr.bf16.mxu0 %v2522_v4  ;;  %v2527_v7 = vld [vmem:[#allocation5 + $0x160] ss:$8 sps:$4 sm:$0xff]   ;;  %v2530_v9 = vld [vmem:[#allocation5 + $0x154] ss:$8 sps:$4 sm:$0xff]   ;;  %v2532_v10 = vld [vmem:[#allocation5 + $0x50] ss:$8 sps:$4 sm:$0xff]  }
  0x2a   :  { %1716 = vmatprep.subr.bf16.mxu1 %v2524_v5  ;;  %v2533_v11 = vld [vmem:[#allocation5 + $0x150] ss:$8 sps:$4 sm:$0xff]   ;;  %v2534_v12 = vld [vmem:[#allocation5 + $0x44] ss:$8 sps:$4 sm:$0xff]   ;;  %v2538_v14 = vld [vmem:[#allocation5 + $0x40] ss:$8 sps:$4 sm:$0xff]  }
  0x2b   :  { %v2536_v13 = vld [vmem:[#allocation5 + $0x144] ss:$8 sps:$4 sm:$0xff]   ;;  %v2539_v15 = vld [vmem:[#allocation5 + $0x140] ss:$8 sps:$4 sm:$0xff]   ;;  %v2540_v16 = vld [vmem:[#allocation5 + $0x34] ss:$8 sps:$4 sm:$0xff]  }
  0x2c   :  { %1676 = vmatpush1.bf16.msra.mxu0 %v2526_v6  ;;  %v2542_v17 = vld [vmem:[#allocation5 + $0x134] ss:$8 sps:$4 sm:$0xff]   ;;  %v2544_v18 = vld [vmem:[#allocation5 + $0x30] ss:$8 sps:$4 sm:$0xff]   ;;  %v2546_v20 = vld [vmem:[#allocation5 + $0x24] ss:$8 sps:$4 sm:$0xff]  }
  0x2d   :  { %1717 = vmatpush1.bf16.msra.mxu1 %v2527_v7  ;;  %1677 = vmatprep.subr.bf16.mxu0 %v2528_v8  ;;  %v2545_v19 = vld [vmem:[#allocation5 + $0x130] ss:$8 sps:$4 sm:$0xff]   ;;  %v2548_v21 = vld [vmem:[#allocation5 + $0x124] ss:$8 sps:$4 sm:$0xff]   ;;  %v2550_v22 = vld [vmem:[#allocation5 + $0x20] ss:$8 sps:$4 sm:$0xff]  }
  0x2e   :  { %1718 = vmatprep.subr.bf16.mxu1 %v2530_v9  ;;  %v2551_v23 = vld [vmem:[#allocation5 + $0x120] ss:$8 sps:$4 sm:$0xff]   ;;  %v2552_v24 = vld [vmem:[#allocation5 + $0x14] ss:$8 sps:$4 sm:$0xff]   ;;  %v2556_v26 = vld [vmem:[#allocation5 + $0x10] ss:$8 sps:$4 sm:$0xff]  }
  0x2f   :  { %v2554_v25 = vld [vmem:[#allocation5 + $0x114] ss:$8 sps:$4 sm:$0xff]   ;;  %v2557_v27 = vld [vmem:[#allocation5 + $0x110] ss:$8 sps:$4 sm:$0xff]   ;;  %v2558_v28 = vld [vmem:[#allocation5 + $0x4] ss:$8 sps:$4 sm:$0xff]  }
  0x30   :  { %1678 = vmatpush1.bf16.msra.mxu0 %v2532_v10  ;;  %v2560_v29 = vld [vmem:[#allocation5 + $0x104] ss:$8 sps:$4 sm:$0xff]   ;;  %v2562_v30 = vld [vmem:[#allocation5] ss:$8 sps:$4 sm:$0xff]   ;;  %v2564_v32 = vld [vmem:[#allocation5 + $0xf4] ss:$8 sps:$4 sm:$0xff]  }
  0x31   :  { %1719 = vmatpush1.bf16.msra.mxu1 %v2533_v11  ;;  %1679 = vmatprep.subr.bf16.mxu0 %v2534_v12  ;;  %v2563_v31 = vld [vmem:[#allocation5 + $0x100] ss:$8 sps:$4 sm:$0xff]   ;;  %v2566_v33 = vld [vmem:[#allocation5 + $0x1f4] ss:$8 sps:$4 sm:$0xff]   ;;  %v2568_v34 = vld [vmem:[#allocation5 + $0xf0] ss:$8 sps:$4 sm:$0xff]  }
  0x32   :  { %1720 = vmatprep.subr.bf16.mxu1 %v2536_v13  ;;  %v2569_v35 = vld [vmem:[#allocation5 + $0x1f0] ss:$8 sps:$4 sm:$0xff]   ;;  %v2570_v36 = vld [vmem:[#allocation5 + $0xe4] ss:$8 sps:$4 sm:$0xff]   ;;  %v2574_v38 = vld [vmem:[#allocation5 + $0xe0] ss:$8 sps:$4 sm:$0xff]  }
  0x33   :  { %v2572_v37 = vld [vmem:[#allocation5 + $0x1e4] ss:$8 sps:$4 sm:$0xff]   ;;  %v2575_v39 = vld [vmem:[#allocation5 + $0x1e0] ss:$8 sps:$4 sm:$0xff]   ;;  %v2576_v40 = vld [vmem:[#allocation5 + $0xd4] ss:$8 sps:$4 sm:$0xff]  }
  0x34   :  { %1680 = vmatpush1.bf16.msra.mxu0 %v2538_v14  ;;  %v2578_v41 = vld [vmem:[#allocation5 + $0x1d4] ss:$8 sps:$4 sm:$0xff]   ;;  %v2580_v42 = vld [vmem:[#allocation5 + $0xd0] ss:$8 sps:$4 sm:$0xff]   ;;  %v2582_v44 = vld [vmem:[#allocation5 + $0xc4] ss:$8 sps:$4 sm:$0xff]  }
  0x35   :  { %1721 = vmatpush1.bf16.msra.mxu1 %v2539_v15  ;;  %1681 = vmatprep.subr.bf16.mxu0 %v2540_v16  ;;  %v2581_v43 = vld [vmem:[#allocation5 + $0x1d0] ss:$8 sps:$4 sm:$0xff]   ;;  %v2584_v45 = vld [vmem:[#allocation5 + $0x1c4] ss:$8 sps:$4 sm:$0xff]   ;;  %v2586_v49 = vld [vmem:[#allocation5 + $0xc0] ss:$8 sps:$4 sm:$0xff]  }
  0x36   :  { %1722 = vmatprep.subr.bf16.mxu1 %v2542_v17  ;;  %v61_v46 = vld [vmem:[#allocation2] sm:$0xff]  ;;  %v62_v48 = vld [vmem:[#allocation2 + $0x8] sm:$0xff]  ;;  %v2588_v52 = vld [vmem:[#allocation5 + $0xb4] ss:$8 sps:$4 sm:$0xff]   ;;  %s3025_s12 = smov [#allocation8]  }
  0x37   :  { %v2198_v47 = vcombine.high %v61_v46, %v61_v46  ;;  %v2587_v50 = vld [vmem:[#allocation5 + $0x1c0] ss:$8 sps:$4 sm:$0xff]   ;;  %v2200_v51 = vcombine.high %v62_v48, %v62_v48  ;;  %v2590_v53 = vld [vmem:[#allocation5 + $0x1b4] ss:$8 sps:$4 sm:$0xff]   ;;  %v2592_v54 = vld [vmem:[#allocation5 + $0xb0] ss:$8 sps:$4 sm:$0xff]   ;;  %v2197_v6 = vcombine.low %v61_v46, %v61_v46  ;;  %v2199_v7 = vcombine.low %v62_v48, %v62_v48 }
  0x38   :  { %1682 = vmatpush1.bf16.msra.mxu0 %v2544_v18  ;;  %v2593_v55 = vld [vmem:[#allocation5 + $0x1b0] ss:$8 sps:$4 sm:$0xff]   ;;  %v2594_v56 = vld [vmem:[#allocation5 + $0xa4] ss:$8 sps:$4 sm:$0xff]   ;;  %v2598_v58 = vld [vmem:[#allocation5 + $0xa0] ss:$8 sps:$4 sm:$0xff]  }
  0x39   :  { %1723 = vmatpush1.bf16.msra.mxu1 %v2545_v19  ;;  %1683 = vmatprep.subr.bf16.mxu0 %v2546_v20  ;;  %v2596_v57 = vld [vmem:[#allocation5 + $0x1a4] ss:$8 sps:$4 sm:$0xff]   ;;  %v2599_v59 = vld [vmem:[#allocation5 + $0x1a0] ss:$8 sps:$4 sm:$0xff]   ;;  %v2600_v60 = vld [vmem:[#allocation5 + $0x94] ss:$8 sps:$4 sm:$0xff]  }
  0x3a   :  { %1724 = vmatprep.subr.bf16.mxu1 %v2548_v21  ;;  %1705 = vmatprep.mubr.bf16.mxu0 %v2198_v47  ;;  %v2602_v61 = vld [vmem:[#allocation5 + $0x194] ss:$8 sps:$4 sm:$0xff]   ;;  %v2604_v62 = vld [vmem:[#allocation5 + $0x90] ss:$8 sps:$4 sm:$0xff]   ;;  %v2606_v0 = vld [vmem:[#allocation5 + $0x84] ss:$8 sps:$4 sm:$0xff]  }
  0x3b   :  { %1746 = vmatprep.mubr.bf16.mxu1 %v2200_v51  ;;  %v2605_v63 = vld [vmem:[#allocation5 + $0x190] ss:$8 sps:$4 sm:$0xff]   ;;  %v2608_v1 = vld [vmem:[#allocation5 + $0x184] ss:$8 sps:$4 sm:$0xff]   ;;  %v2610_v2 = vld [vmem:[#allocation5 + $0x80] ss:$8 sps:$4 sm:$0xff]  }
  0x3c   :  { %1684 = vmatpush1.bf16.msra.mxu0 %v2550_v22  ;;  %v2611_v3 = vld [vmem:[#allocation5 + $0x180] ss:$8 sps:$4 sm:$0xff]   ;;  %v2618_v4 = vld [vmem:[#allocation5 + $0x274] ss:$8 sps:$4 sm:$0xff]   ;;  %v2616_v8 = vld [vmem:[#allocation5 + $0x270] ss:$8 sps:$4 sm:$0xff]  }
  0x3d   :  { %1725 = vmatpush1.bf16.msra.mxu1 %v2551_v23  ;;  %1685 = vmatprep.subr.bf16.mxu0 %v2552_v24  ;;  %v2621_v5 = vld [vmem:[#allocation5 + $0x374] ss:$8 sps:$4 sm:$0xff]   ;;  %v2619_v9 = vld [vmem:[#allocation5 + $0x370] ss:$8 sps:$4 sm:$0xff]   ;;  %v2624_v10 = vld [vmem:[#allocation5 + $0x264] ss:$8 sps:$4 sm:$0xff]  }
  0x3e   :  { %1726 = vmatprep.subr.bf16.mxu1 %v2554_v25  ;;  %v2627_v11 = vld [vmem:[#allocation5 + $0x364] ss:$8 sps:$4 sm:$0xff]   ;;  %v2622_v12 = vld [vmem:[#allocation5 + $0x260] ss:$8 sps:$4 sm:$0xff]   ;;  %v2630_v14 = vld [vmem:[#allocation5 + $0x254] ss:$8 sps:$4 sm:$0xff]  }
  0x3f   :  { %v2625_v13 = vld [vmem:[#allocation5 + $0x360] ss:$8 sps:$4 sm:$0xff]   ;;  %v2633_v15 = vld [vmem:[#allocation5 + $0x354] ss:$8 sps:$4 sm:$0xff]   ;;  %v2628_v16 = vld [vmem:[#allocation5 + $0x250] ss:$8 sps:$4 sm:$0xff]  }
  0x40   :  { %1686 = vmatpush1.bf16.msra.mxu0 %v2556_v26  ;;  %v2631_v17 = vld [vmem:[#allocation5 + $0x350] ss:$8 sps:$4 sm:$0xff]   ;;  %v2636_v18 = vld [vmem:[#allocation5 + $0x244] ss:$8 sps:$4 sm:$0xff]   ;;  %v2634_v20 = vld [vmem:[#allocation5 + $0x240] ss:$8 sps:$4 sm:$0xff]  }
  0x41   :  { %1727 = vmatpush1.bf16.msra.mxu1 %v2557_v27  ;;  %1687 = vmatprep.subr.bf16.mxu0 %v2558_v28  ;;  %v2639_v19 = vld [vmem:[#allocation5 + $0x344] ss:$8 sps:$4 sm:$0xff]   ;;  %v2637_v21 = vld [vmem:[#allocation5 + $0x340] ss:$8 sps:$4 sm:$0xff]   ;;  %v2642_v22 = vld [vmem:[#allocation5 + $0x234] ss:$8 sps:$4 sm:$0xff]  }
  0x42   :  { %1728 = vmatprep.subr.bf16.mxu1 %v2560_v29  ;;  %v2645_v23 = vld [vmem:[#allocation5 + $0x334] ss:$8 sps:$4 sm:$0xff]   ;;  %v2640_v24 = vld [vmem:[#allocation5 + $0x230] ss:$8 sps:$4 sm:$0xff]   ;;  %v2648_v26 = vld [vmem:[#allocation5 + $0x224] ss:$8 sps:$4 sm:$0xff]  }
  0x43   :  { %v2643_v25 = vld [vmem:[#allocation5 + $0x330] ss:$8 sps:$4 sm:$0xff]   ;;  %v2651_v27 = vld [vmem:[#allocation5 + $0x324] ss:$8 sps:$4 sm:$0xff]   ;;  %v2646_v28 = vld [vmem:[#allocation5 + $0x220] ss:$8 sps:$4 sm:$0xff]  }
  0x44   :  { %1688 = vmatpush1.bf16.msra.mxu0 %v2562_v30  ;;  %v2649_v29 = vld [vmem:[#allocation5 + $0x320] ss:$8 sps:$4 sm:$0xff]   ;;  %v2654_v30 = vld [vmem:[#allocation5 + $0x214] ss:$8 sps:$4 sm:$0xff]   ;;  %v2672_v46 = vld [vmem:[#allocation5 + $0x2e4] ss:$8 sps:$4 sm:$0xff]  }
  0x45   :  { %1729 = vmatpush1.bf16.msra.mxu1 %v2563_v31  ;;  %1689 = vmatprep.subr.bf16.mxu0 %v2564_v32  ;;  %v2657_v31 = vld [vmem:[#allocation5 + $0x314] ss:$8 sps:$4 sm:$0xff]   ;;  %v2675_v47 = vld [vmem:[#allocation5 + $0x3e4] ss:$8 sps:$4 sm:$0xff]   ;;  %v2670_v48 = vld [vmem:[#allocation5 + $0x2e0] ss:$8 sps:$4 sm:$0xff]  }
  0x46   :  { %1730 = vmatprep.subr.bf16.mxu1 %v2566_v33  ;;  %v3065_v32 = vld [vmem:[#allocation2 + $0x10] sm:$0xff]  ;;  %v3067_v33 = vld [vmem:[#allocation2 + $0x18] sm:$0xff]  ;;  %s2187_s13 = sshll.u32 %s3025_s12, 4  ;;  %s2188_s13 = int_to_ptr.vmem [resolvable:$true] %s2187_s13 }
  0x47   :  { %v2681_v51 = vld [vmem:[#allocation5 + $0x3d4] ss:$8 sps:$4 sm:$0xff]   ;;  %s2992_s14 = scalar_lea.vmem %s2188_s13, 128  ;;  %p2997_p2 = scmp.lt.s32.totalorder %s2188_s13, %s2188_s13 }
  0x48   :  { %1690 = vmatpush2.bf16.msra.mxu0 %v2568_v34  ;;  %v2652_v34 = vld [vmem:[#allocation5 + $0x210] ss:$8 sps:$4 sm:$0xff]   ;;  %p2993_p1 = scmp.ne.s32.totalorder %s2188_s13, %s2992_s14  ;;  %p2998_p3 = scmp.lt.s32.totalorder %s2992_s14, %s2992_s14 }
  0x49   :  { %1731 = vmatpush2.bf16.msra.mxu1 %v2569_v35  ;;  %1691 = vmatprep.subr.bf16.mxu0 %v2570_v36  ;;  %v2655_v35 = vld [vmem:[#allocation5 + $0x310] ss:$8 sps:$4 sm:$0xff]   ;;  %v2202_v36 = vcombine.high %v3065_v32, %v3065_v32 }
  0x4a   :  { %1732 = vmatprep.subr.bf16.mxu1 %v2572_v37  ;;  %v2204_v37 = vcombine.high %v3067_v33, %v3067_v33  ;;  %p2999_p4 = por %p2998_p3, %p2997_p2 }
  0x4c   :  { %1692 = vmatpush2.bf16.msra.mxu0 %v2574_v38  ;;  %v2660_v38 = vld [vmem:[#allocation5 + $0x204] ss:$8 sps:$4 sm:$0xff]   ;;  %p3000_p5 = pnand %p2999_p4, %p2993_p1 }
  0x4d   :  { %1733 = vmatpush2.bf16.msra.mxu1 %v2575_v39  ;;  %1693 = vmatprep.subr.bf16.mxu0 %v2576_v40  ;;  %v2663_v39 = vld [vmem:[#allocation5 + $0x304] ss:$8 sps:$4 sm:$0xff]   ;;  %v2658_v40 = vld [vmem:[#allocation5 + $0x200] ss:$8 sps:$4 sm:$0xff]  }
  0x4e   :  { %1734 = vmatprep.subr.bf16.mxu1 %v2578_v41  ;;  %v2661_v41 = vld [vmem:[#allocation5 + $0x300] ss:$8 sps:$4 sm:$0xff]  }
  0x50   :  { %1694 = vmatpush2.bf16.msra.mxu0 %v2580_v42  ;;  %v2666_v42 = vld [vmem:[#allocation5 + $0x2f4] ss:$8 sps:$4 sm:$0xff]  }
  0x51   :  { %1735 = vmatpush2.bf16.msra.mxu1 %v2581_v43  ;;  %1695 = vmatprep.subr.bf16.mxu0 %v2582_v44  ;;  %v2669_v43 = vld [vmem:[#allocation5 + $0x3f4] ss:$8 sps:$4 sm:$0xff]   ;;  %v2664_v44 = vld [vmem:[#allocation5 + $0x2f0] ss:$8 sps:$4 sm:$0xff]  }
  0x52   :  { %1736 = vmatprep.subr.bf16.mxu1 %v2584_v45  ;;  %v2667_v45 = vld [vmem:[#allocation5 + $0x3f0] ss:$8 sps:$4 sm:$0xff]  }
  0x54   :  { %1696 = vmatpush2.bf16.msra.mxu0 %v2586_v49  ;;  %v2673_v49 = vld [vmem:[#allocation5 + $0x3e0] ss:$8 sps:$4 sm:$0xff]  }
  0x55   :  { %1737 = vmatpush2.bf16.msra.mxu1 %v2587_v50  ;;  %1697 = vmatprep.subr.bf16.mxu0 %v2588_v52  ;;  %v2678_v50 = vld [vmem:[#allocation5 + $0x2d4] ss:$8 sps:$4 sm:$0xff]   ;;  %v2676_v52 = vld [vmem:[#allocation5 + $0x2d0] ss:$8 sps:$4 sm:$0xff]  }
  0x56   :  { %1738 = vmatprep.subr.bf16.mxu1 %v2590_v53  ;;  %v2679_v53 = vld [vmem:[#allocation5 + $0x3d0] ss:$8 sps:$4 sm:$0xff]  }
  0x58   :  { %1698 = vmatpush2.bf16.msra.mxu0 %v2592_v54  ;;  %v2684_v54 = vld [vmem:[#allocation5 + $0x2c4] ss:$8 sps:$4 sm:$0xff]  }
  0x59   :  { %1739 = vmatpush2.bf16.msra.mxu1 %v2593_v55  ;;  %1699 = vmatprep.subr.bf16.mxu0 %v2594_v56  ;;  %v2687_v55 = vld [vmem:[#allocation5 + $0x3c4] ss:$8 sps:$4 sm:$0xff]   ;;  %v2682_v56 = vld [vmem:[#allocation5 + $0x2c0] ss:$8 sps:$4 sm:$0xff]  }
  0x5a   :  { %1740 = vmatprep.subr.bf16.mxu1 %v2596_v57  ;;  %v2685_v57 = vld [vmem:[#allocation5 + $0x3c0] ss:$8 sps:$4 sm:$0xff]  }
  0x5c   :  { %1700 = vmatpush2.bf16.msra.mxu0 %v2598_v58  ;;  %v2690_v58 = vld [vmem:[#allocation5 + $0x2b4] ss:$8 sps:$4 sm:$0xff]  }
  0x5d   :  { %1741 = vmatpush2.bf16.msra.mxu1 %v2599_v59  ;;  %1701 = vmatprep.subr.bf16.mxu0 %v2600_v60  ;;  %v2693_v59 = vld [vmem:[#allocation5 + $0x3b4] ss:$8 sps:$4 sm:$0xff]   ;;  %v2688_v60 = vld [vmem:[#allocation5 + $0x2b0] ss:$8 sps:$4 sm:$0xff]  }
  0x5e   :  { %1742 = vmatprep.subr.bf16.mxu1 %v2602_v61  ;;  %v2691_v61 = vld [vmem:[#allocation5 + $0x3b0] ss:$8 sps:$4 sm:$0xff]  }
  0x60   :  { %1702 = vmatpush2.bf16.msra.mxu0 %v2604_v62  ;;  %v2696_v62 = vld [vmem:[#allocation5 + $0x2a4] ss:$8 sps:$4 sm:$0xff]  }
  0x61   :  { %1743 = vmatpush2.bf16.msra.mxu1 %v2605_v63  ;;  %1703 = vmatprep.subr.bf16.mxu0 %v2606_v0  ;;  %v2699_v63 = vld [vmem:[#allocation5 + $0x3a4] ss:$8 sps:$4 sm:$0xff]   ;;  %v2694_v0 = vld [vmem:[#allocation5 + $0x2a0] ss:$8 sps:$4 sm:$0xff]  }
  0x62   :  { %1744 = vmatprep.subr.bf16.mxu1 %v2608_v1  ;;  %v2697_v1 = vld [vmem:[#allocation5 + $0x3a0] ss:$8 sps:$4 sm:$0xff]  }
  0x64   :  { %1704 = vmatpush2.bf16.msra.mxu0 %v2610_v2  ;;  %v2702_v2 = vld [vmem:[#allocation5 + $0x294] ss:$8 sps:$4 sm:$0xff]  }
  0x65   :  { %1745 = vmatpush2.bf16.msra.mxu1 %v2611_v3  ;;  %1755 = vmatprep.subr.bf16.mxu0 %v2618_v4  ;;  %v2705_v3 = vld [vmem:[#allocation5 + $0x394] ss:$8 sps:$4 sm:$0xff]   ;;  %v2700_v4 = vld [vmem:[#allocation5 + $0x290] ss:$8 sps:$4 sm:$0xff]  }
  0x66   :  { %1796 = vmatprep.subr.bf16.mxu1 %v2621_v5  ;;  %v2703_v5 = vld [vmem:[#allocation5 + $0x390] ss:$8 sps:$4 sm:$0xff]  }
  0x67   :  { %1706 = vmatmul.mubr.bf16.vlgmr.msra.gmra.mxu0 %v2197_v6  ;;  %v2708_v6 = vld [vmem:[#allocation5 + $0x284] ss:$8 sps:$4 sm:$0xff]  }
  0x68   :  { %1747 = vmatmul.mubr.bf16.vlgmr.msra.gmra.mxu1 %v2199_v7  ;;  %1756 = vmatpush1.bf16.msra.mxu0 %v2616_v8  ;;  %v2711_v7 = vld [vmem:[#allocation5 + $0x384] ss:$8 sps:$4 sm:$0xff]   ;;  %v2706_v8 = vld [vmem:[#allocation5 + $0x280] ss:$8 sps:$4 sm:$0xff]  }
  0x69   :  { %1797 = vmatpush1.bf16.msra.mxu1 %v2619_v9  ;;  %1757 = vmatprep.subr.bf16.mxu0 %v2624_v10  ;;  %v2709_v9 = vld [vmem:[#allocation5 + $0x380] ss:$8 sps:$4 sm:$0xff]   ;;  %v2718_v10 = vld [vmem:[#allocation5 + $0x474] ss:$8 sps:$4 sm:$0xff]  }
  0x6a   :  { %1798 = vmatprep.subr.bf16.mxu1 %v2627_v11  ;;  %1787 = vmatprep.mubr.bf16.mxu0 %v2202_v36  ;;  %v2721_v11 = vld [vmem:[#allocation5 + $0x574] ss:$8 sps:$4 sm:$0xff]   ;;  %v2748_v36 = vld [vmem:[#allocation5 + $0x424] ss:$8 sps:$4 sm:$0xff]  }
  0x6b   :  { %1828 = vmatprep.mubr.bf16.mxu1 %v2204_v37  ;;  %v2751_v37 = vld [vmem:[#allocation5 + $0x524] ss:$8 sps:$4 sm:$0xff]  }
  0x6c   :  { %1758 = vmatpush1.bf16.msra.mxu0 %v2622_v12  ;;  %v2201_v12 = vcombine.low %v3065_v32, %v3065_v32  ;;  %v2742_v32 = vld [vmem:[#allocation5 + $0x434] ss:$8 sps:$4 sm:$0xff]  }
  0x6d   :  { %1799 = vmatpush1.bf16.msra.mxu1 %v2625_v13  ;;  %1759 = vmatprep.subr.bf16.mxu0 %v2630_v14  ;;  %v2203_v13 = vcombine.low %v3067_v33, %v3067_v33  ;;  %v2716_v14 = vld [vmem:[#allocation5 + $0x470] ss:$8 sps:$4 sm:$0xff]   ;;  %v2745_v33 = vld [vmem:[#allocation5 + $0x534] ss:$8 sps:$4 sm:$0xff]  }
  0x6e   :  { %1800 = vmatprep.subr.bf16.mxu1 %v2633_v15  ;;  %v2719_v15 = vld [vmem:[#allocation5 + $0x570] ss:$8 sps:$4 sm:$0xff]  }
  0x70   :  { %1760 = vmatpush1.bf16.msra.mxu0 %v2628_v16  ;;  %v2724_v16 = vld [vmem:[#allocation5 + $0x464] ss:$8 sps:$4 sm:$0xff]  }
  0x71   :  { %1801 = vmatpush1.bf16.msra.mxu1 %v2631_v17  ;;  %1761 = vmatprep.subr.bf16.mxu0 %v2636_v18  ;;  %v2727_v17 = vld [vmem:[#allocation5 + $0x564] ss:$8 sps:$4 sm:$0xff]  }
  0x72   :  { %1802 = vmatprep.subr.bf16.mxu1 %v2639_v19  ;;  %v3077_v18 = vld [vmem:[#allocation2 + $0x20] sm:$0xff]  ;;  %v3079_v19 = vld [vmem:[#allocation2 + $0x28] sm:$0xff] }
  0x74   :  { %1762 = vmatpush1.bf16.msra.mxu0 %v2634_v20  ;;  %v2206_v20 = vcombine.high %v3077_v18, %v3077_v18 }
  0x75   :  { %1803 = vmatpush1.bf16.msra.mxu1 %v2637_v21  ;;  %1763 = vmatprep.subr.bf16.mxu0 %v2642_v22  ;;  %v2208_v21 = vcombine.high %v3079_v19, %v3079_v19  ;;  %v2722_v22 = vld [vmem:[#allocation5 + $0x460] ss:$8 sps:$4 sm:$0xff]  }
  0x76   :  { %1804 = vmatprep.subr.bf16.mxu1 %v2645_v23  ;;  %v2725_v23 = vld [vmem:[#allocation5 + $0x560] ss:$8 sps:$4 sm:$0xff]  }
  0x78   :  { %1764 = vmatpush1.bf16.msra.mxu0 %v2640_v24  ;;  %v2730_v24 = vld [vmem:[#allocation5 + $0x454] ss:$8 sps:$4 sm:$0xff]  }
  0x79   :  { %1805 = vmatpush1.bf16.msra.mxu1 %v2643_v25  ;;  %1765 = vmatprep.subr.bf16.mxu0 %v2648_v26  ;;  %v2733_v25 = vld [vmem:[#allocation5 + $0x554] ss:$8 sps:$4 sm:$0xff]   ;;  %v2728_v26 = vld [vmem:[#allocation5 + $0x450] ss:$8 sps:$4 sm:$0xff]  }
  0x7a   :  { %1806 = vmatprep.subr.bf16.mxu1 %v2651_v27  ;;  %v2731_v27 = vld [vmem:[#allocation5 + $0x550] ss:$8 sps:$4 sm:$0xff]  }
  0x7c   :  { %1766 = vmatpush1.bf16.msra.mxu0 %v2646_v28  ;;  %v2736_v28 = vld [vmem:[#allocation5 + $0x444] ss:$8 sps:$4 sm:$0xff]  }
  0x7d   :  { %1807 = vmatpush1.bf16.msra.mxu1 %v2649_v29  ;;  %1767 = vmatprep.subr.bf16.mxu0 %v2654_v30  ;;  %v2739_v29 = vld [vmem:[#allocation5 + $0x544] ss:$8 sps:$4 sm:$0xff]   ;;  %v2734_v30 = vld [vmem:[#allocation5 + $0x440] ss:$8 sps:$4 sm:$0xff]  }
  0x7e   :  { %1808 = vmatprep.subr.bf16.mxu1 %v2657_v31  ;;  %v2737_v31 = vld [vmem:[#allocation5 + $0x540] ss:$8 sps:$4 sm:$0xff]  }
  0x80   :  { %1768 = vmatpush1.bf16.msra.mxu0 %v2652_v34  ;;  %v2740_v34 = vld [vmem:[#allocation5 + $0x430] ss:$8 sps:$4 sm:$0xff]  }
  0x81   :  { %1809 = vmatpush1.bf16.msra.mxu1 %v2655_v35  ;;  %1769 = vmatprep.subr.bf16.mxu0 %v2660_v38  ;;  %v2743_v35 = vld [vmem:[#allocation5 + $0x530] ss:$8 sps:$4 sm:$0xff]   ;;  %v2746_v38 = vld [vmem:[#allocation5 + $0x420] ss:$8 sps:$4 sm:$0xff]  }
  0x82   :  { %1810 = vmatprep.subr.bf16.mxu1 %v2663_v39  ;;  %v2749_v39 = vld [vmem:[#allocation5 + $0x520] ss:$8 sps:$4 sm:$0xff]  }
  0x84   :  { %1770 = vmatpush1.bf16.msra.mxu0 %v2658_v40  ;;  %v2754_v40 = vld [vmem:[#allocation5 + $0x414] ss:$8 sps:$4 sm:$0xff]  }
  0x85   :  { %1811 = vmatpush1.bf16.msra.mxu1 %v2661_v41  ;;  %1771 = vmatprep.subr.bf16.mxu0 %v2666_v42  ;;  %v2757_v41 = vld [vmem:[#allocation5 + $0x514] ss:$8 sps:$4 sm:$0xff]   ;;  %v2752_v42 = vld [vmem:[#allocation5 + $0x410] ss:$8 sps:$4 sm:$0xff]  }
  0x86   :  { %1812 = vmatprep.subr.bf16.mxu1 %v2669_v43  ;;  %v2755_v43 = vld [vmem:[#allocation5 + $0x510] ss:$8 sps:$4 sm:$0xff]  }
  0x88   :  { %1772 = vmatpush2.bf16.msra.mxu0 %v2664_v44  ;;  %v2760_v44 = vld [vmem:[#allocation5 + $0x404] ss:$8 sps:$4 sm:$0xff]  }
  0x89   :  { %1813 = vmatpush2.bf16.msra.mxu1 %v2667_v45  ;;  %1773 = vmatprep.subr.bf16.mxu0 %v2672_v46  ;;  %v2763_v45 = vld [vmem:[#allocation5 + $0x504] ss:$8 sps:$4 sm:$0xff]   ;;  %v2758_v46 = vld [vmem:[#allocation5 + $0x400] ss:$8 sps:$4 sm:$0xff]  }
  0x8a   :  { %1814 = vmatprep.subr.bf16.mxu1 %v2675_v47  ;;  %v2761_v47 = vld [vmem:[#allocation5 + $0x500] ss:$8 sps:$4 sm:$0xff]  }
  0x8c   :  { %1774 = vmatpush2.bf16.msra.mxu0 %v2670_v48  ;;  %v2766_v48 = vld [vmem:[#allocation5 + $0x4f4] ss:$8 sps:$4 sm:$0xff]  }
  0x8d   :  { %1815 = vmatpush2.bf16.msra.mxu1 %v2673_v49  ;;  %1775 = vmatprep.subr.bf16.mxu0 %v2678_v50  ;;  %v2769_v49 = vld [vmem:[#allocation5 + $0x5f4] ss:$8 sps:$4 sm:$0xff]   ;;  %v2764_v50 = vld [vmem:[#allocation5 + $0x4f0] ss:$8 sps:$4 sm:$0xff]  }
  0x8e   :  { %1816 = vmatprep.subr.bf16.mxu1 %v2681_v51  ;;  %v2767_v51 = vld [vmem:[#allocation5 + $0x5f0] ss:$8 sps:$4 sm:$0xff]  }
  0x90   :  { %1776 = vmatpush2.bf16.msra.mxu0 %v2676_v52  ;;  %v2772_v52 = vld [vmem:[#allocation5 + $0x4e4] ss:$8 sps:$4 sm:$0xff]  }
  0x91   :  { %1817 = vmatpush2.bf16.msra.mxu1 %v2679_v53  ;;  %1777 = vmatprep.subr.bf16.mxu0 %v2684_v54  ;;  %v2775_v53 = vld [vmem:[#allocation5 + $0x5e4] ss:$8 sps:$4 sm:$0xff]   ;;  %v2770_v54 = vld [vmem:[#allocation5 + $0x4e0] ss:$8 sps:$4 sm:$0xff]  }
  0x92   :  { %1818 = vmatprep.subr.bf16.mxu1 %v2687_v55  ;;  %v2773_v55 = vld [vmem:[#allocation5 + $0x5e0] ss:$8 sps:$4 sm:$0xff]  }
  0x94   :  { %1778 = vmatpush2.bf16.msra.mxu0 %v2682_v56  ;;  %v2778_v56 = vld [vmem:[#allocation5 + $0x4d4] ss:$8 sps:$4 sm:$0xff]  }
  0x95   :  { %1819 = vmatpush2.bf16.msra.mxu1 %v2685_v57  ;;  %1779 = vmatprep.subr.bf16.mxu0 %v2690_v58  ;;  %v2781_v57 = vld [vmem:[#allocation5 + $0x5d4] ss:$8 sps:$4 sm:$0xff]   ;;  %v2776_v58 = vld [vmem:[#allocation5 + $0x4d0] ss:$8 sps:$4 sm:$0xff]  }
  0x96   :  { %1820 = vmatprep.subr.bf16.mxu1 %v2693_v59  ;;  %v2779_v59 = vld [vmem:[#allocation5 + $0x5d0] ss:$8 sps:$4 sm:$0xff]  }
  0x98   :  { %1780 = vmatpush2.bf16.msra.mxu0 %v2688_v60  ;;  %v2784_v60 = vld [vmem:[#allocation5 + $0x4c4] ss:$8 sps:$4 sm:$0xff]  }
  0x99   :  { %1821 = vmatpush2.bf16.msra.mxu1 %v2691_v61  ;;  %1781 = vmatprep.subr.bf16.mxu0 %v2696_v62  ;;  %v2787_v61 = vld [vmem:[#allocation5 + $0x5c4] ss:$8 sps:$4 sm:$0xff]   ;;  %v2782_v62 = vld [vmem:[#allocation5 + $0x4c0] ss:$8 sps:$4 sm:$0xff]  }
  0x9a   :  { %1822 = vmatprep.subr.bf16.mxu1 %v2699_v63  ;;  %v2785_v63 = vld [vmem:[#allocation5 + $0x5c0] ss:$8 sps:$4 sm:$0xff]  }
  0x9c   :  { %1782 = vmatpush2.bf16.msra.mxu0 %v2694_v0  ;;  %v2790_v0 = vld [vmem:[#allocation5 + $0x4b4] ss:$8 sps:$4 sm:$0xff]  }
  0x9d   :  { %1823 = vmatpush2.bf16.msra.mxu1 %v2697_v1  ;;  %1783 = vmatprep.subr.bf16.mxu0 %v2702_v2  ;;  %v2793_v1 = vld [vmem:[#allocation5 + $0x5b4] ss:$8 sps:$4 sm:$0xff]   ;;  %v2788_v2 = vld [vmem:[#allocation5 + $0x4b0] ss:$8 sps:$4 sm:$0xff]  }
  0x9e   :  { %1824 = vmatprep.subr.bf16.mxu1 %v2705_v3  ;;  %v2791_v3 = vld [vmem:[#allocation5 + $0x5b0] ss:$8 sps:$4 sm:$0xff]  }
  0xa0   :  { %1784 = vmatpush2.bf16.msra.mxu0 %v2700_v4  ;;  %v2796_v4 = vld [vmem:[#allocation5 + $0x4a4] ss:$8 sps:$4 sm:$0xff]  }
  0xa1   :  { %1825 = vmatpush2.bf16.msra.mxu1 %v2703_v5  ;;  %1785 = vmatprep.subr.bf16.mxu0 %v2708_v6  ;;  %v2799_v5 = vld [vmem:[#allocation5 + $0x5a4] ss:$8 sps:$4 sm:$0xff]   ;;  %v2794_v6 = vld [vmem:[#allocation5 + $0x4a0] ss:$8 sps:$4 sm:$0xff]  }
  0xa2   :  { %1826 = vmatprep.subr.bf16.mxu1 %v2711_v7  ;;  %v2797_v7 = vld [vmem:[#allocation5 + $0x5a0] ss:$8 sps:$4 sm:$0xff]  }
  0xa4   :  { %1786 = vmatpush2.bf16.msra.mxu0 %v2706_v8  ;;  %v2802_v8 = vld [vmem:[#allocation5 + $0x494] ss:$8 sps:$4 sm:$0xff]  }
  0xa5   :  { %1827 = vmatpush2.bf16.msra.mxu1 %v2709_v9  ;;  %1837 = vmatprep.subr.bf16.mxu0 %v2718_v10  ;;  %v2805_v9 = vld [vmem:[#allocation5 + $0x594] ss:$8 sps:$4 sm:$0xff]   ;;  %v2800_v10 = vld [vmem:[#allocation5 + $0x490] ss:$8 sps:$4 sm:$0xff]  }
  0xa6   :  { %1878 = vmatprep.subr.bf16.mxu1 %v2721_v11  ;;  %v2803_v11 = vld [vmem:[#allocation5 + $0x590] ss:$8 sps:$4 sm:$0xff]  }
  0xa7   :  { %1788 = vmatmul.mubr.bf16.vlgmr.msra.gmra.mxu0 %v2201_v12  ;;  %v2808_v12 = vld [vmem:[#allocation5 + $0x484] ss:$8 sps:$4 sm:$0xff]  }
  0xa8   :  { %1829 = vmatmul.mubr.bf16.vlgmr.msra.gmra.mxu1 %v2203_v13  ;;  %1838 = vmatpush1.bf16.msra.mxu0 %v2716_v14  ;;  %v2811_v13 = vld [vmem:[#allocation5 + $0x584] ss:$8 sps:$4 sm:$0xff]   ;;  %v2806_v14 = vld [vmem:[#allocation5 + $0x480] ss:$8 sps:$4 sm:$0xff]  }
  0xa9   :  { %1879 = vmatpush1.bf16.msra.mxu1 %v2719_v15  ;;  %1839 = vmatprep.subr.bf16.mxu0 %v2724_v16  ;;  %v2809_v15 = vld [vmem:[#allocation5 + $0x580] ss:$8 sps:$4 sm:$0xff]   ;;  %v2818_v16 = vld [vmem:[#allocation5 + $0x674] ss:$8 sps:$4 sm:$0xff]  }
  0xaa   :  { %1880 = vmatprep.subr.bf16.mxu1 %v2727_v17  ;;  %1869 = vmatprep.mubr.bf16.mxu0 %v2206_v20  ;;  %v2821_v17 = vld [vmem:[#allocation5 + $0x774] ss:$8 sps:$4 sm:$0xff]   ;;  %v2205_v20 = vcombine.low %v3077_v18, %v3077_v18 }
  0xab   :  { %1910 = vmatprep.mubr.bf16.mxu1 %v2208_v21  ;;  %v2207_v21 = vcombine.low %v3079_v19, %v3079_v19  ;;  %v2822_v19 = vld [vmem:[#allocation5 + $0x660] ss:$8 sps:$4 sm:$0xff]  }
  0xac   :  { %1840 = vmatpush1.bf16.msra.mxu0 %v2722_v22  ;;  %v3089_v22 = vld [vmem:[#allocation2 + $0x30] sm:$0xff] }
  0xad   :  { %1881 = vmatpush1.bf16.msra.mxu1 %v2725_v23  ;;  %1841 = vmatprep.subr.bf16.mxu0 %v2730_v24  ;;  %v3091_v23 = vld [vmem:[#allocation2 + $0x38] sm:$0xff] }
  0xae   :  { %1882 = vmatprep.subr.bf16.mxu1 %v2733_v25  ;;  %v2816_v24 = vld [vmem:[#allocation5 + $0x670] ss:$8 sps:$4 sm:$0xff]   ;;  %v2212_v18 = vcombine.high %v3091_v23, %v3091_v23 }
  0xaf   :  { %v2819_v25 = vld [vmem:[#allocation5 + $0x770] ss:$8 sps:$4 sm:$0xff]  }
  0xb0   :  { %1842 = vmatpush1.bf16.msra.mxu0 %v2728_v26  ;;  %v2824_v26 = vld [vmem:[#allocation5 + $0x664] ss:$8 sps:$4 sm:$0xff]  }
  0xb1   :  { %1883 = vmatpush1.bf16.msra.mxu1 %v2731_v27  ;;  %1843 = vmatprep.subr.bf16.mxu0 %v2736_v28  ;;  %v2827_v27 = vld [vmem:[#allocation5 + $0x764] ss:$8 sps:$4 sm:$0xff]   ;;  %v2210_v28 = vcombine.high %v3089_v22, %v3089_v22 }
  0xb2   :  { %1884 = vmatprep.subr.bf16.mxu1 %v2739_v29  ;;  %v2825_v29 = vld [vmem:[#allocation5 + $0x760] ss:$8 sps:$4 sm:$0xff]  }
  0xb4   :  { %1844 = vmatpush1.bf16.msra.mxu0 %v2734_v30  ;;  %v2830_v30 = vld [vmem:[#allocation5 + $0x654] ss:$8 sps:$4 sm:$0xff]  }
  0xb5   :  { %1885 = vmatpush1.bf16.msra.mxu1 %v2737_v31  ;;  %1845 = vmatprep.subr.bf16.mxu0 %v2742_v32  ;;  %v2833_v31 = vld [vmem:[#allocation5 + $0x754] ss:$8 sps:$4 sm:$0xff]   ;;  %v2828_v32 = vld [vmem:[#allocation5 + $0x650] ss:$8 sps:$4 sm:$0xff]  }
  0xb6   :  { %1886 = vmatprep.subr.bf16.mxu1 %v2745_v33  ;;  %v2831_v33 = vld [vmem:[#allocation5 + $0x750] ss:$8 sps:$4 sm:$0xff]  }
  0xb8   :  { %1846 = vmatpush1.bf16.msra.mxu0 %v2740_v34  ;;  %v2836_v34 = vld [vmem:[#allocation5 + $0x644] ss:$8 sps:$4 sm:$0xff]  }
  0xb9   :  { %1887 = vmatpush1.bf16.msra.mxu1 %v2743_v35  ;;  %1847 = vmatprep.subr.bf16.mxu0 %v2748_v36  ;;  %v2839_v35 = vld [vmem:[#allocation5 + $0x744] ss:$8 sps:$4 sm:$0xff]   ;;  %v2834_v36 = vld [vmem:[#allocation5 + $0x640] ss:$8 sps:$4 sm:$0xff]  }
  0xba   :  { %1888 = vmatprep.subr.bf16.mxu1 %v2751_v37  ;;  %v2837_v37 = vld [vmem:[#allocation5 + $0x740] ss:$8 sps:$4 sm:$0xff]  }
  0xbc   :  { %1848 = vmatpush1.bf16.msra.mxu0 %v2746_v38  ;;  %v2842_v38 = vld [vmem:[#allocation5 + $0x634] ss:$8 sps:$4 sm:$0xff]  }
  0xbd   :  { %1889 = vmatpush1.bf16.msra.mxu1 %v2749_v39  ;;  %1849 = vmatprep.subr.bf16.mxu0 %v2754_v40  ;;  %v2845_v39 = vld [vmem:[#allocation5 + $0x734] ss:$8 sps:$4 sm:$0xff]   ;;  %v2840_v40 = vld [vmem:[#allocation5 + $0x630] ss:$8 sps:$4 sm:$0xff]  }
  0xbe   :  { %1890 = vmatprep.subr.bf16.mxu1 %v2757_v41  ;;  %v2843_v41 = vld [vmem:[#allocation5 + $0x730] ss:$8 sps:$4 sm:$0xff]  }
  0xc0   :  { %1850 = vmatpush1.bf16.msra.mxu0 %v2752_v42  ;;  %v2848_v42 = vld [vmem:[#allocation5 + $0x624] ss:$8 sps:$4 sm:$0xff]  }
  0xc1   :  { %1891 = vmatpush1.bf16.msra.mxu1 %v2755_v43  ;;  %1851 = vmatprep.subr.bf16.mxu0 %v2760_v44  ;;  %v2851_v43 = vld [vmem:[#allocation5 + $0x724] ss:$8 sps:$4 sm:$0xff]   ;;  %v2846_v44 = vld [vmem:[#allocation5 + $0x620] ss:$8 sps:$4 sm:$0xff]  }
  0xc2   :  { %1892 = vmatprep.subr.bf16.mxu1 %v2763_v45  ;;  %v2849_v45 = vld [vmem:[#allocation5 + $0x720] ss:$8 sps:$4 sm:$0xff]  }
  0xc4   :  { %1852 = vmatpush1.bf16.msra.mxu0 %v2758_v46  ;;  %v2854_v46 = vld [vmem:[#allocation5 + $0x614] ss:$8 sps:$4 sm:$0xff]  }
  0xc5   :  { %1893 = vmatpush1.bf16.msra.mxu1 %v2761_v47  ;;  %1853 = vmatprep.subr.bf16.mxu0 %v2766_v48  ;;  %v2857_v47 = vld [vmem:[#allocation5 + $0x714] ss:$8 sps:$4 sm:$0xff]   ;;  %v2852_v48 = vld [vmem:[#allocation5 + $0x610] ss:$8 sps:$4 sm:$0xff]  }
  0xc6   :  { %1894 = vmatprep.subr.bf16.mxu1 %v2769_v49  ;;  %v2855_v49 = vld [vmem:[#allocation5 + $0x710] ss:$8 sps:$4 sm:$0xff]  }
  0xc8   :  { %1854 = vmatpush2.bf16.msra.mxu0 %v2764_v50  ;;  %v2860_v50 = vld [vmem:[#allocation5 + $0x604] ss:$8 sps:$4 sm:$0xff]  }
  0xc9   :  { %1895 = vmatpush2.bf16.msra.mxu1 %v2767_v51  ;;  %1855 = vmatprep.subr.bf16.mxu0 %v2772_v52  ;;  %v2863_v51 = vld [vmem:[#allocation5 + $0x704] ss:$8 sps:$4 sm:$0xff]   ;;  %v2858_v52 = vld [vmem:[#allocation5 + $0x600] ss:$8 sps:$4 sm:$0xff]  }
  0xca   :  { %1896 = vmatprep.subr.bf16.mxu1 %v2775_v53  ;;  %v2861_v53 = vld [vmem:[#allocation5 + $0x700] ss:$8 sps:$4 sm:$0xff]  }
  0xcc   :  { %1856 = vmatpush2.bf16.msra.mxu0 %v2770_v54  ;;  %v2866_v54 = vld [vmem:[#allocation5 + $0x6f4] ss:$8 sps:$4 sm:$0xff]  }
  0xcd   :  { %1897 = vmatpush2.bf16.msra.mxu1 %v2773_v55  ;;  %1857 = vmatprep.subr.bf16.mxu0 %v2778_v56  ;;  %v2869_v55 = vld [vmem:[#allocation5 + $0x7f4] ss:$8 sps:$4 sm:$0xff]   ;;  %v2864_v56 = vld [vmem:[#allocation5 + $0x6f0] ss:$8 sps:$4 sm:$0xff]  }
  0xce   :  { %1898 = vmatprep.subr.bf16.mxu1 %v2781_v57  ;;  %v2867_v57 = vld [vmem:[#allocation5 + $0x7f0] ss:$8 sps:$4 sm:$0xff]  }
  0xd0   :  { %1858 = vmatpush2.bf16.msra.mxu0 %v2776_v58  ;;  %v2872_v58 = vld [vmem:[#allocation5 + $0x6e4] ss:$8 sps:$4 sm:$0xff]  }
  0xd1   :  { %1899 = vmatpush2.bf16.msra.mxu1 %v2779_v59  ;;  %1859 = vmatprep.subr.bf16.mxu0 %v2784_v60  ;;  %v2875_v59 = vld [vmem:[#allocation5 + $0x7e4] ss:$8 sps:$4 sm:$0xff]   ;;  %v2870_v60 = vld [vmem:[#allocation5 + $0x6e0] ss:$8 sps:$4 sm:$0xff]  }
  0xd2   :  { %1900 = vmatprep.subr.bf16.mxu1 %v2787_v61  ;;  %v2873_v61 = vld [vmem:[#allocation5 + $0x7e0] ss:$8 sps:$4 sm:$0xff]  }
  0xd4   :  { %1860 = vmatpush2.bf16.msra.mxu0 %v2782_v62  ;;  %v2878_v62 = vld [vmem:[#allocation5 + $0x6d4] ss:$8 sps:$4 sm:$0xff]  }
  0xd5   :  { %1901 = vmatpush2.bf16.msra.mxu1 %v2785_v63  ;;  %1861 = vmatprep.subr.bf16.mxu0 %v2790_v0  ;;  %v2881_v63 = vld [vmem:[#allocation5 + $0x7d4] ss:$8 sps:$4 sm:$0xff]   ;;  %v2876_v0 = vld [vmem:[#allocation5 + $0x6d0] ss:$8 sps:$4 sm:$0xff]  }
  0xd6   :  { %1902 = vmatprep.subr.bf16.mxu1 %v2793_v1  ;;  %v2879_v1 = vld [vmem:[#allocation5 + $0x7d0] ss:$8 sps:$4 sm:$0xff]  }
  0xd8   :  { %1862 = vmatpush2.bf16.msra.mxu0 %v2788_v2  ;;  %v2884_v2 = vld [vmem:[#allocation5 + $0x6c4] ss:$8 sps:$4 sm:$0xff]  }
  0xd9   :  { %1903 = vmatpush2.bf16.msra.mxu1 %v2791_v3  ;;  %1863 = vmatprep.subr.bf16.mxu0 %v2796_v4  ;;  %v2887_v3 = vld [vmem:[#allocation5 + $0x7c4] ss:$8 sps:$4 sm:$0xff]   ;;  %v2882_v4 = vld [vmem:[#allocation5 + $0x6c0] ss:$8 sps:$4 sm:$0xff]  }
  0xda   :  { %1904 = vmatprep.subr.bf16.mxu1 %v2799_v5  ;;  %v2885_v5 = vld [vmem:[#allocation5 + $0x7c0] ss:$8 sps:$4 sm:$0xff]  }
  0xdc   :  { %1864 = vmatpush2.bf16.msra.mxu0 %v2794_v6  ;;  %v2890_v6 = vld [vmem:[#allocation5 + $0x6b4] ss:$8 sps:$4 sm:$0xff]  }
  0xdd   :  { %1905 = vmatpush2.bf16.msra.mxu1 %v2797_v7  ;;  %1865 = vmatprep.subr.bf16.mxu0 %v2802_v8  ;;  %v2893_v7 = vld [vmem:[#allocation5 + $0x7b4] ss:$8 sps:$4 sm:$0xff]   ;;  %v2888_v8 = vld [vmem:[#allocation5 + $0x6b0] ss:$8 sps:$4 sm:$0xff]  }
  0xde   :  { %1906 = vmatprep.subr.bf16.mxu1 %v2805_v9  ;;  %v2891_v9 = vld [vmem:[#allocation5 + $0x7b0] ss:$8 sps:$4 sm:$0xff]  }
  0xe0   :  { %1866 = vmatpush2.bf16.msra.mxu0 %v2800_v10  ;;  %v2896_v10 = vld [vmem:[#allocation5 + $0x6a4] ss:$8 sps:$4 sm:$0xff]  }
  0xe1   :  { %1907 = vmatpush2.bf16.msra.mxu1 %v2803_v11  ;;  %1867 = vmatprep.subr.bf16.mxu0 %v2808_v12  ;;  %v2899_v11 = vld [vmem:[#allocation5 + $0x7a4] ss:$8 sps:$4 sm:$0xff]   ;;  %v2894_v12 = vld [vmem:[#allocation5 + $0x6a0] ss:$8 sps:$4 sm:$0xff]  }
  0xe2   :  { %1908 = vmatprep.subr.bf16.mxu1 %v2811_v13  ;;  %v2897_v13 = vld [vmem:[#allocation5 + $0x7a0] ss:$8 sps:$4 sm:$0xff]  }
  0xe4   :  { %1868 = vmatpush2.bf16.msra.mxu0 %v2806_v14  ;;  %v327_v14 = vlaneseq }
  0xe5   :  { %1909 = vmatpush2.bf16.msra.mxu1 %v2809_v15  ;;  %1919 = vmatprep.subr.bf16.mxu0 %v2818_v16  ;;  %v2902_v15 = vld [vmem:[#allocation5 + $0x694] ss:$8 sps:$4 sm:$0xff]  }
  0xe6   :  { %1960 = vmatprep.subr.bf16.mxu1 %v2821_v17  ;;  %v2905_v16 = vld [vmem:[#allocation5 + $0x794] ss:$8 sps:$4 sm:$0xff]   ;;  %v2900_v17 = vld [vmem:[#allocation5 + $0x690] ss:$8 sps:$4 sm:$0xff]  }
  0xe7   :  { %1870 = vmatmul.mubr.bf16.vlgmr.msra.gmra.mxu0 %v2205_v20  ;;  %v2903_v20 = vld [vmem:[#allocation5 + $0x790] ss:$8 sps:$4 sm:$0xff]  }
  0xe8   :  { %1911 = vmatmul.mubr.bf16.vlgmr.msra.gmra.mxu1 %v2207_v21  ;;  %1920 = vmatpush1.bf16.msra.mxu0 %v2816_v24  ;;  %v328_v21 = vshrl.u32 %v327_v14, 7  ;;  %v2908_v24 = vld [vmem:[#allocation5 + $0x684] ss:$8 sps:$4 sm:$0xff]  }
  0xe9   :  { %1961 = vmatpush1.bf16.msra.mxu1 %v2819_v25  ;;  %1921 = vmatprep.subr.bf16.mxu0 %v2824_v26  ;;  %v2911_v25 = vld [vmem:[#allocation5 + $0x784] ss:$8 sps:$4 sm:$0xff]   ;;  %v2906_v26 = vld [vmem:[#allocation5 + $0x680] ss:$8 sps:$4 sm:$0xff]  }
  0xea   :  { %1962 = vmatprep.subr.bf16.mxu1 %v2827_v27  ;;  %1951 = vmatprep.mubr.bf16.mxu0 %v2210_v28  ;;  %v2909_v27 = vld [vmem:[#allocation5 + $0x780] ss:$8 sps:$4 sm:$0xff]   ;;  %v329_v28 = vsub.s32 0, %v328_v21 }
  0xeb   :  { %1992 = vmatprep.mubr.bf16.mxu1 %v2212_v18  ;;  %v325_v18 = vld [vmem:[%s3112_s2] sm:$0x3] }
  0xec   :  { %1922 = vmatpush1.bf16.msra.mxu0 %v2822_v19  ;;  %v333_v19 = vsub.s32 1, %v328_v21 }
  0xed   :  { %1963 = vmatpush1.bf16.msra.mxu1 %v2825_v29  ;;  %1923 = vmatprep.subr.bf16.mxu0 %v2830_v30  ;;  %v2209_v29 = vcombine.low %v3089_v22, %v3089_v22  ;;  %v2211_v30 = vcombine.low %v3091_v23, %v3091_v23  ;;  %v2917_v23 = vld [vmem:[#allocation7 + $0x38] sm:$0xff]  }
  0xee   :  { %1964 = vmatprep.subr.bf16.mxu1 %v2833_v31  ;;  %v330_v31 = vrot.slane %v325_v18, %v329_v28 }
  0xf0   :  { %1924 = vmatpush1.bf16.msra.mxu0 %v2828_v32  ;;  %v334_v32 = vrot.slane %v325_v18, %v333_v19 }
  0xf1   :  { %1965 = vmatpush1.bf16.msra.mxu1 %v2831_v33  ;;  %1925 = vmatprep.subr.bf16.mxu0 %v2836_v34 }
  0xf2   :  { %1966 = vmatprep.subr.bf16.mxu1 %v2839_v35 }
  0xf4   :  { %1926 = vmatpush1.bf16.msra.mxu0 %v2834_v36 }
  0xf5   :  { %1967 = vmatpush1.bf16.msra.mxu1 %v2837_v37  ;;  %1927 = vmatprep.subr.bf16.mxu0 %v2842_v38 }
  0xf6   :  { %1968 = vmatprep.subr.bf16.mxu1 %v2845_v39 }
  0xf8   :  { %1928 = vmatpush1.bf16.msra.mxu0 %v2840_v40 }
  0xf9   :  { %1969 = vmatpush1.bf16.msra.mxu1 %v2843_v41  ;;  %1929 = vmatprep.subr.bf16.mxu0 %v2848_v42 }
  0xfa   :  { %1970 = vmatprep.subr.bf16.mxu1 %v2851_v43 }
  0xfc   :  { %1930 = vmatpush1.bf16.msra.mxu0 %v2846_v44  ;;  %v2916_v44 = vld [vmem:[#allocation7 + $0x78] sm:$0xff]  }
  0xfd   :  { %1971 = vmatpush1.bf16.msra.mxu1 %v2849_v45  ;;  %1931 = vmatprep.subr.bf16.mxu0 %v2854_v46  ;;  %v2918_v45 = vld [vmem:[#allocation7 + $0x70] sm:$0xff]  }
  0xfe   :  { %1972 = vmatprep.subr.bf16.mxu1 %v2857_v47  ;;  %v2919_v46 = vld [vmem:[#allocation7 + $0x30] sm:$0xff]   ;;  %v2920_v47 = vld [vmem:[#allocation7 + $0x68] sm:$0xff]  }
 0x100   :  { %1932 = vmatpush1.bf16.msra.mxu0 %v2852_v48  ;;  %v2921_v48 = vld [vmem:[#allocation7 + $0x28] sm:$0xff]  }
 0x101   :  { %1973 = vmatpush1.bf16.msra.mxu1 %v2855_v49  ;;  %1933 = vmatprep.subr.bf16.mxu0 %v2860_v50  ;;  %v2922_v49 = vld [vmem:[#allocation7 + $0x60] sm:$0xff]  }
 0x102   :  { %1974 = vmatprep.subr.bf16.mxu1 %v2863_v51  ;;  %v2923_v50 = vld [vmem:[#allocation7 + $0x20] sm:$0xff]   ;;  %v2924_v51 = vld [vmem:[#allocation7 + $0x58] sm:$0xff]  }
 0x104   :  { %1934 = vmatpush1.bf16.msra.mxu0 %v2858_v52  ;;  %v2925_v52 = vld [vmem:[#allocation7 + $0x18] sm:$0xff]  }
 0x105   :  { %1975 = vmatpush1.bf16.msra.mxu1 %v2861_v53  ;;  %1935 = vmatprep.subr.bf16.mxu0 %v2866_v54  ;;  %v2926_v53 = vld [vmem:[#allocation7 + $0x50] sm:$0xff]  }
 0x106   :  { %1976 = vmatprep.subr.bf16.mxu1 %v2869_v55  ;;  %v2927_v54 = vld [vmem:[#allocation7 + $0x10] sm:$0xff]  }
 0x108   :  { %1936 = vmatpush2.bf16.msra.mxu0 %v2864_v56 }
 0x109   :  { %1977 = vmatpush2.bf16.msra.mxu1 %v2867_v57  ;;  %1937 = vmatprep.subr.bf16.mxu0 %v2872_v58 }
 0x10a   :  { %1978 = vmatprep.subr.bf16.mxu1 %v2875_v59 }
 0x10c   :  { %1938 = vmatpush2.bf16.msra.mxu0 %v2870_v60  ;;  %v2928_v60 = vld [vmem:[#allocation7 + $0x48] sm:$0xff]  }
 0x10d   :  { %1979 = vmatpush2.bf16.msra.mxu1 %v2873_v61  ;;  %1939 = vmatprep.subr.bf16.mxu0 %v2878_v62 }
 0x10e   :  { %1980 = vmatprep.subr.bf16.mxu1 %v2881_v63  ;;  %v2929_v63 = vld [vmem:[#allocation7 + $0x8] sm:$0xff]  }
 0x110   :  { %1940 = vmatpush2.bf16.msra.mxu0 %v2876_v0 }
 0x111   :  { %1981 = vmatpush2.bf16.msra.mxu1 %v2879_v1  ;;  %1941 = vmatprep.subr.bf16.mxu0 %v2884_v2 }
 0x112   :  { %1982 = vmatprep.subr.bf16.mxu1 %v2887_v3 }
 0x114   :  { %1942 = vmatpush2.bf16.msra.mxu0 %v2882_v4 }
 0x115   :  { %1983 = vmatpush2.bf16.msra.mxu1 %v2885_v5  ;;  %1943 = vmatprep.subr.bf16.mxu0 %v2890_v6  ;;  %v2930_v5 = vld [vmem:[#allocation7 + $0x40] sm:$0xff]  }
 0x116   :  { %1984 = vmatprep.subr.bf16.mxu1 %v2893_v7  ;;  %v2931_v6 = vld [vmem:[#allocation7] sm:$0xff]  }
 0x118   :  { %1944 = vmatpush2.bf16.msra.mxu0 %v2888_v8 }
 0x119   :  { %1985 = vmatpush2.bf16.msra.mxu1 %v2891_v9  ;;  %1945 = vmatprep.subr.bf16.mxu0 %v2896_v10 }
 0x11a   :  { %1986 = vmatprep.subr.bf16.mxu1 %v2899_v11 }
 0x11c   :  { %1946 = vmatpush2.bf16.msra.mxu0 %v2894_v12 }
 0x11d   :  { %1987 = vmatpush2.bf16.msra.mxu1 %v2897_v13  ;;  %1947 = vmatprep.subr.bf16.mxu0 %v2902_v15 }
 0x11e   :  { %1988 = vmatprep.subr.bf16.mxu1 %v2905_v16 }
 0x120   :  { %1948 = vmatpush2.bf16.msra.mxu0 %v2900_v17 }
 0x121   :  { %1989 = vmatpush2.bf16.msra.mxu1 %v2903_v20  ;;  %1949 = vmatprep.subr.bf16.mxu0 %v2908_v24 }
 0x122   :  { %1990 = vmatprep.subr.bf16.mxu1 %v2911_v25 }
 0x124   :  { %1950 = vmatpush2.bf16.msra.mxu0 %v2906_v26 }
 0x125   :  { %1991 = vmatpush2.bf16.msra.mxu1 %v2909_v27  ;;  %2486 = vmatprep.subr.bf16.mxu0 %v2916_v44 }
 0x127   :  { %v1707_v33 = vpop.f32.mrf.mxu0  ;;  %1952 = vmatmul.mubr.bf16.vlgmr.msra.gmra.mxu0 %v2209_v29 }
 0x128   :  { %v1748_v34 = vpop.f32.mrf.mxu1  ;;  %1993 = vmatmul.mubr.bf16.vlgmr.msra.gmra.mxu1 %v2211_v30  ;;  %v1708_v35 = vadd.f32 %v1707_v33, %v330_v31  ;;  %2487 = vmatpush3.bf16.msra.mxu0 %v2917_v23 }
 0x129   :  { %v1709_v36 = vpop.f32.mrf.mxu0  ;;  %2488 = vmatprep.subr.bf16.mxu0 %v2918_v45 }
 0x12a   :  { %v1750_v37 = vpop.f32.mrf.mxu1  ;;  %v1749_v38 = vadd.f32 %v1748_v34, %v1708_v35  ;;  %v1710_v39 = vadd.f32 %v1709_v36, %v334_v32 }
 0x12b   :  { %v1711_v40 = vpop.f32.mrf.mxu0 }
 0x12c   :  { %v1752_v41 = vpop.f32.mrf.mxu1  ;;  %v1751_v42 = vadd.f32 %v1750_v37, %v1710_v39  ;;  %2489 = vmatpush3.bf16.msra.mxu0 %v2919_v46 }
 0x12d   :  { %v1712_v22 = vpop.f32.mrf.mxu0  ;;  %2490 = vmatprep.subr.bf16.mxu0 %v2920_v47 }
 0x12e   :  { %v1753_v43 = vpop.f32.mrf.mxu1 }
 0x130   :  { %2491 = vmatpush3.bf16.msra.mxu0 %v2921_v48 }
 0x131   :  { %2492 = vmatprep.subr.bf16.mxu0 %v2922_v49 }
 0x134   :  { %2493 = vmatpush3.bf16.msra.mxu0 %v2923_v50 }
 0x135   :  { %2494 = vmatprep.subr.bf16.mxu0 %v2924_v51 }
 0x138   :  { %2495 = vmatpush3.bf16.msra.mxu0 %v2925_v52 }
 0x139   :  { %2496 = vmatprep.subr.bf16.mxu0 %v2926_v53 }
 0x13c   :  { %2497 = vmatpush3.bf16.msra.mxu0 %v2927_v54 }
 0x13d   :  { %2498 = vmatprep.subr.bf16.mxu0 %v2928_v60 }
 0x140   :  { %2499 = vmatpush3.bf16.msra.mxu0 %v2929_v63 }
 0x141   :  { %2500 = vmatprep.subr.bf16.mxu0 %v2930_v5 }
 0x144   :  { %2501 = vmatpush3.bf16.msra.mxu0 %v2931_v6 }
 0x167   :  { %v1789_v55 = vpop.f32.mrf.mxu0 }
 0x168   :  { %v1830_v56 = vpop.f32.mrf.mxu1  ;;  %v1790_v57 = vadd.f32 %v1789_v55, %v1749_v38  ;;  %v2469_v38 = vld [vmem:[%s3114_s4] ss:$0 sm:$0xff] }
 0x169   :  { %v1791_v58 = vpop.f32.mrf.mxu0 }
 0x16a   :  { %v1832_v59 = vpop.f32.mrf.mxu1  ;;  %v1831_v61 = vadd.f32 %v1830_v56, %v1790_v57  ;;  %v1792_v62 = vadd.f32 %v1791_v58, %v1751_v42 }
 0x16b   :  { %v1793_v0 = vpop.f32.mrf.mxu0 }
 0x16c   :  { %v1834_v1 = vpop.f32.mrf.mxu1  ;;  %v1833_v2 = vadd.f32 %v1832_v59, %v1792_v62 }
 0x16d   :  { %v1794_v3 = vpop.f32.mrf.mxu0 }
 0x16e   :  { %v1835_v4 = vpop.f32.mrf.mxu1 }
 0x1a7   :  { %v1871_v7 = vpop.f32.mrf.mxu0 }
 0x1a8   :  { %v1912_v8 = vpop.f32.mrf.mxu1  ;;  %v1872_v9 = vadd.f32 %v1871_v7, %v1831_v61 }
 0x1a9   :  { %v1873_v10 = vpop.f32.mrf.mxu0 }
 0x1aa   :  { %v1914_v11 = vpop.f32.mrf.mxu1  ;;  %v1913_v12 = vadd.f32 %v1912_v8, %v1872_v9  ;;  %v1874_v17 = vadd.f32 %v1873_v10, %v1833_v2 }
 0x1ab   :  { %v1875_v13 = vpop.f32.mrf.mxu0 }
 0x1ac   :  { %v1916_v14 = vpop.f32.mrf.mxu1  ;;  %v1915_v24 = vadd.f32 %v1914_v11, %v1874_v17 }
 0x1ad   :  { %v1876_v15 = vpop.f32.mrf.mxu0 }
 0x1ae   :  { %v1917_v16 = vpop.f32.mrf.mxu1 }
 0x1e7   :  { %v1953_v20 = vpop.f32.mrf.mxu0 }
 0x1e8   :  { %v1994_v21 = vpop.f32.mrf.mxu1  ;;  %v1954_v25 = vadd.f32 %v1953_v20, %v1913_v12 }
 0x1e9   :  { %v1955_v26 = vpop.f32.mrf.mxu0 }
 0x1ea   :  { %v1996_v27 = vpop.f32.mrf.mxu1  ;;  %v1995_v28 = vadd.f32 %v1994_v21, %v1954_v25  ;;  %v1956_v18 = vadd.f32 %v1955_v26, %v1915_v24 }
 0x1eb   :  { %v1957_v19 = vpop.f32.mrf.mxu0 }
 0x1ec   :  { %v1998_v29 = vpop.f32.mrf.mxu1  ;;  %v1997_v30 = vadd.f32 %v1996_v27, %v1956_v18  ;;  %v2001_v31 = vmax.f32 %v1995_v28, 0.0 }
 0x1ed   :  { %v1958_v32 = vpop.f32.mrf.mxu0 }
 0x1ee   :  { %v1999_v33 = vpop.f32.mrf.mxu1  ;;  %v2002_v34 = vmax.f32 %v1997_v30, 0.0  ;;  %v2003_v36 = vpack.c.bf16 %v2001_v31, %v2001_v31 }
 0x1f0   :  { %v2004_v35 = vpack.c.bf16 %v2002_v34, %v2002_v34 }
 0x1f2   :  { %2172 = vmatprep.mubr.bf16.mxu0 %v2004_v35 }
 0x1f3   :  { %2173 = vmatmul.mubr.bf16.vlgmr.msra.gmra.mxu0 %v2003_v36 }
 0x2b3   :  { %v2502_v37 = vpop.f32.mrf.mxu0 }
 0x2b5   :  { %v2503_v39 = vpop.f32.mrf.mxu0 }
 0x2b6   :  { %v2504_v40 = vadd.f32 %v2503_v39, %v2502_v37 }
 0x2b7   :  { %v2505_v41 = vpop.f32.mrf.mxu0 }
 0x2b8   :  { %v2175_v42 = vadd.f32 %v2504_v40, %v2469_v38 }
 0x2b9   :  { %v2506_v22 = vpop.f32.mrf.mxu0 }
 0x2ba   :  { %2180 = vst [vmem:[#allocation8] sm:$0xff] %v2175_v42 }
 0x2bb   :  { %3003 = shalt.err (!%p3000_p5)
}
 0x2bc   :  { %2190 = dma.vmem_to_hbm [thread:$0]  %s2188_s13, 128, %s3115_s5, [#allocation4]  }
 0x2bd   :  { %3016 = dma.done.wait [#allocation4], 128  }
 0x2be   :  { %3017 = vsyncadd [#allocation4], 4294967168 }
 0x2bf   :  { %2194 = vsyncpa [#allocation3], 1 }
 0x2c0   :  { %2195 = vsyncpa [#allocation6], 1 }
 0x2c1   :  { %2196 = vsyncpa [#allocation4], 1 }

</bundles_post_ra>
